<compile_context>
chip_gen: v5e
topology: v5e:2x2
jax: 0.10.0
libtpu: 0.0.40
codegen_flags: <defaults>
</compile_context>

<pallas_src>
import jax
import jax.numpy as jnp
from jax.experimental import pallas as pl
from jax.experimental.pallas import tpu as pltpu


def _vmem_capacity_bytes():
    """Best-effort VMEM capacity query; conservative (v7x-sized) fallback."""
    try:
        return int(pltpu.get_tpu_info().vmem_capacity_bytes)
    except Exception:
        return 64 * 1024 * 1024


def _make_kernel(s_tile, seq_len, need_seq_mask):
    def kernel(x_ref, m_ref, o_ref, acc_ref, den_ref):
        # x_ref: (b_tile, s_tile, h_tile)  activation block, original dtype
        # m_ref: (b_tile, s_tile, 1)       mask block
        # o_ref: (b_tile, h_tile)          f32 output block
        # acc_ref: (b_tile, h_tile) f32    running masked sum
        # den_ref: (b_tile, 1) f32         running mask sum
        s_idx = pl.program_id(2)

        @pl.when(s_idx == 0)
        def _init():
            acc_ref[...] = jnp.zeros_like(acc_ref)
            den_ref[...] = jnp.zeros_like(den_ref)

        x = x_ref[...]
        m = m_ref[...].astype(jnp.float32)

        if need_seq_mask:
            # Ragged S remainder: zero out-of-range positions so boundary-block
            # garbage (possibly NaN) never reaches the accumulators.
            pos = s_idx * s_tile + jax.lax.broadcasted_iota(
                jnp.int32, (1, s_tile, 1), dimension=1
            )
            valid = pos < seq_len
            m = jnp.where(valid, m, 0.0)
            x = jnp.where(valid, x, jnp.zeros_like(x))

        # Masked sum for this S-tile; mask broadcast over H is a lane splat.
        xw = x.astype(jnp.float32) * m                 # (b_tile, s_tile, h_tile)
        acc_ref[...] += jnp.sum(xw, axis=1)            # (b_tile, h_tile)
        den_ref[...] += jnp.sum(m, axis=1)             # (b_tile, 1)

        @pl.when(s_idx == pl.num_programs(2) - 1)
        def _finalize():
            denom = jnp.maximum(den_ref[...], jnp.float32(1e-9))
            inv = 1.0 / denom                          # one divide per row
            o_ref[...] = acc_ref[...] * inv            # lane-splat multiply

    return kernel


def mean_pooling(last_hidden_state, attention_mask):
    """Masked mean pooling over axis 1. Returns float32 [B, H]."""
    B, S, H = last_hidden_state.shape

    x = last_hidden_state
    m = attention_mask
    if m.dtype == jnp.bool_:
        m = m.astype(jnp.int32)
    m3 = m.reshape(B, S, 1)  # metadata-only; puts S on the sublane axis

    itemsize = jnp.dtype(x.dtype).itemsize

    # Per-generation block sizing: bigger blocks on 128 MiB-VMEM parts
    # (v5e/v6e), smaller on 64 MiB parts (v7x) so we stay within the default
    # scoped VMEM limit there.
    vmem_cap = _vmem_capacity_bytes()
    big_vmem = vmem_cap >= 96 * 1024 * 1024
    target_block_bytes = (8 if big_vmem else 2) * 1024 * 1024
    h_tile_max = 1024 if big_vmem else 512

    # Batch tile: 8 sublane rows, or the whole batch when it's smaller
    # (block == full dim satisfies the (8,128) rule for the 2-D output block).
    b_tile = B if B < 8 else 8

    # Hidden tile: full H if small; otherwise a 128-multiple, preferring a
    # divisor of H (H is almost always a multiple of 128) to avoid waste.
    if H <= h_tile_max:
        h_tile = H
    else:
        h_tile = (h_tile_max // 128) * 128
        if H % 128 == 0:
            while H % h_tile != 0:
                h_tile -= 128

    # Sequence tile: sized from the per-block byte budget, multiple of 8.
    s_budget = max(8, target_block_bytes // max(1, b_tile * h_tile * itemsize))
    if S <= s_budget:
        s_tile = S
    else:
        s_tile = max(8, (s_budget // 8) * 8)
    need_seq_mask = (S % s_tile) != 0

    grid = (pl.cdiv(B, b_tile), pl.cdiv(H, h_tile), pl.cdiv(S, s_tile))

    cp_kwargs = dict(dimension_semantics=("parallel", "parallel", "arbitrary"))
    if big_vmem:
        # Plenty of headroom on 128 MiB parts for the larger blocks + f32
        # elementwise temporaries; on 64 MiB parts the small blocks fit the
        # default scoped limit, so we don't set one.
        cp_kwargs["vmem_limit_bytes"] = 80 * 1024 * 1024

    kernel = _make_kernel(s_tile, S, need_seq_mask)

    out = pl.pallas_call(
        kernel,
        out_shape=jax.ShapeDtypeStruct((B, H), jnp.float32),
        grid=grid,
        in_specs=[
            pl.BlockSpec((b_tile, s_tile, h_tile), lambda b, h, s: (b, s, h)),
            pl.BlockSpec((b_tile, s_tile, 1), lambda b, h, s: (b, s, 0)),
        ],
        out_specs=pl.BlockSpec((b_tile, h_tile), lambda b, h, s: (b, h)),
        scratch_shapes=[
            pltpu.VMEM((b_tile, h_tile), jnp.float32),
            pltpu.VMEM((b_tile, 1), jnp.float32),
        ],
        compiler_params=pltpu.CompilerParams(**cp_kwargs),
    )(x, m3)

    return out


def mean_pooling_ref(last_hidden_state, attention_mask):
    # Pure-JAX reference mirroring the PyTorch forward exactly.
    m = attention_mask[..., None].astype(jnp.float32)
    sum_emb = jnp.sum(last_hidden_state.astype(jnp.float32) * m, axis=1)
    sum_mask = jnp.maximum(jnp.sum(m, axis=1), jnp.float32(1e-9))
    return sum_emb / sum_mask


if __name__ == "__main__":
    B, S, H = 2, 8, 32
    key = jax.random.PRNGKey(0)
    k1, _ = jax.random.split(key)

    last_hidden_state = jax.random.normal(k1, (B, S, H), dtype=jnp.float32)
    # Mask: ones up to a per-row length, zeros after (typical attention mask).
    lengths = jnp.array([5, 8], dtype=jnp.int32)
    attention_mask = (
        jnp.arange(S, dtype=jnp.int32)[None, :] < lengths[:, None]
    ).astype(jnp.int32)

    out = mean_pooling(last_hidden_state, attention_mask)
    out = jax.block_until_ready(out)

    ref = mean_pooling_ref(last_hidden_state, attention_mask)
    assert out.shape == (B, H)
    assert jnp.allclose(out, ref, atol=1e-5, rtol=1e-5)

    print("KERNEL_OK")
</pallas_src>

<mosaic_0001>
module attributes {stable_mosaic.version = 11 : i64} {
  func.func @kernel(%arg0: i32, %arg1: i32, %arg2: i32, %arg3: memref<2x8x32xf32, #tpu.memory_space<vmem>>, %arg4: memref<2x8x1xi32, #tpu.memory_space<vmem>>, %arg5: memref<2x32xf32, #tpu.memory_space<vmem>>, %arg6: memref<2x32xf32, #tpu.memory_space<vmem>>, %arg7: memref<2x1xf32, #tpu.memory_space<vmem>>) attributes {dimension_semantics = [#tpu.dimension_semantics<parallel>, #tpu.dimension_semantics<parallel>, #tpu.dimension_semantics<arbitrary>], iteration_bounds = array<i64: 1, 1, 1>, scalar_prefetch = 0 : i64, scratch_operands = 2 : i64, tpu.core_type = #tpu.core_type<tc>, window_params = [{transform_indices = @transform_0, window_bounds = array<i64: 2, 8, 32>}, {transform_indices = @transform_1, window_bounds = array<i64: 2, 8, 1>}, {transform_indices = @transform_2, window_bounds = array<i64: 2, 32>}]} {
    %c0_i32 = arith.constant 0 : i32
    %0 = arith.cmpi eq, %arg2, %c0_i32 : i32
    %1 = arith.extui %0 : i1 to i32
    %c0_i32_0 = arith.constant 0 : i32
    %2 = arith.cmpi ne, %1, %c0_i32_0 : i32
    scf.if %2 {
      %cst_17 = arith.constant 0.000000e+00 : f32
      %19 = vector.broadcast %cst_17 : f32 to vector<2x32xf32>
      %c0_18 = arith.constant 0 : index
      %c0_19 = arith.constant 0 : index
      %20 = vector.load %arg6[%c0_18, %c0_19] : memref<2x32xf32, #tpu.memory_space<vmem>>, vector<2x32xf32>
      tpu.vector_store %arg6[%c0_18, %c0_19], %19 {strides = array<i32>} : memref<2x32xf32, #tpu.memory_space<vmem>>, vector<2x32xf32>,
      %cst_20 = arith.constant 0.000000e+00 : f32
      %21 = vector.broadcast %cst_20 : f32 to vector<2x1xf32>
      %c0_21 = arith.constant 0 : index
      %c0_22 = arith.constant 0 : index
      %22 = vector.load %arg7[%c0_21, %c0_22] : memref<2x1xf32, #tpu.memory_space<vmem>>, vector<2x1xf32>
      tpu.vector_store %arg7[%c0_21, %c0_22], %21 {strides = array<i32>} : memref<2x1xf32, #tpu.memory_space<vmem>>, vector<2x1xf32>,
    } else {
    }
    %c0 = arith.constant 0 : index
    %c0_1 = arith.constant 0 : index
    %c0_2 = arith.constant 0 : index
    %3 = vector.load %arg3[%c0, %c0_1, %c0_2] : memref<2x8x32xf32, #tpu.memory_space<vmem>>, vector<2x8x32xf32>
    %c0_3 = arith.constant 0 : index
    %c0_4 = arith.constant 0 : index
    %c0_5 = arith.constant 0 : index
    %4 = vector.load %arg4[%c0_3, %c0_4, %c0_5] : memref<2x8x1xi32, #tpu.memory_space<vmem>>, vector<2x8x1xi32>
    %5 = arith.sitofp %4 : vector<2x8x1xi32> to vector<2x8x1xf32>
    %6 = vector.broadcast %5 : vector<2x8x1xf32> to vector<2x8x32xf32>
    %7 = arith.mulf %3, %6 : vector<2x8x32xf32>
    %c0_6 = arith.constant 0 : index
    %c0_7 = arith.constant 0 : index
    %8 = vector.load %arg6[%c0_6, %c0_7] : memref<2x32xf32, #tpu.memory_space<vmem>>, vector<2x32xf32>
    %cst = arith.constant dense<0.000000e+00> : vector<2x32xf32>
    %9 = vector.multi_reduction <add>, %7, %cst [1] : vector<2x8x32xf32> to vector<2x32xf32>
    %10 = arith.addf %8, %9 : vector<2x32xf32>
    %c0_8 = arith.constant 0 : index
    %c0_9 = arith.constant 0 : index
    %11 = vector.load %arg6[%c0_8, %c0_9] : memref<2x32xf32, #tpu.memory_space<vmem>>, vector<2x32xf32>
    tpu.vector_store %arg6[%c0_8, %c0_9], %10 {strides = array<i32>} : memref<2x32xf32, #tpu.memory_space<vmem>>, vector<2x32xf32>,
    %c0_10 = arith.constant 0 : index
    %c0_11 = arith.constant 0 : index
    %12 = vector.load %arg7[%c0_10, %c0_11] : memref<2x1xf32, #tpu.memory_space<vmem>>, vector<2x1xf32>
    %cst_12 = arith.constant dense<0.000000e+00> : vector<2x1xf32>
    %13 = vector.multi_reduction <add>, %5, %cst_12 [1] : vector<2x8x1xf32> to vector<2x1xf32>
    %14 = arith.addf %12, %13 : vector<2x1xf32>
    %c0_13 = arith.constant 0 : index
    %c0_14 = arith.constant 0 : index
    %15 = vector.load %arg7[%c0_13, %c0_14] : memref<2x1xf32, #tpu.memory_space<vmem>>, vector<2x1xf32>
    tpu.vector_store %arg7[%c0_13, %c0_14], %14 {strides = array<i32>} : memref<2x1xf32, #tpu.memory_space<vmem>>, vector<2x1xf32>,
    %c0_i32_15 = arith.constant 0 : i32
    %16 = arith.cmpi eq, %arg2, %c0_i32_15 : i32
    %17 = arith.extui %16 : i1 to i32
    %c0_i32_16 = arith.constant 0 : i32
    %18 = arith.cmpi ne, %17, %c0_i32_16 : i32
    scf.if %18 {
      %c0_17 = arith.constant 0 : index
      %c0_18 = arith.constant 0 : index
      %19 = vector.load %arg7[%c0_17, %c0_18] : memref<2x1xf32, #tpu.memory_space<vmem>>, vector<2x1xf32>
      %cst_19 = arith.constant 9.99999971E-10 : f32
      %20 = vector.broadcast %cst_19 : f32 to vector<2x1xf32>
      %21 = arith.maximumf %19, %20 : vector<2x1xf32>
      %cst_20 = arith.constant 1.000000e+00 : f32
      %22 = vector.broadcast %cst_20 : f32 to vector<2x1xf32>
      %23 = arith.divf %22, %21 : vector<2x1xf32>
      %c0_21 = arith.constant 0 : index
      %c0_22 = arith.constant 0 : index
      %24 = vector.load %arg6[%c0_21, %c0_22] : memref<2x32xf32, #tpu.memory_space<vmem>>, vector<2x32xf32>
      %25 = vector.broadcast %23 : vector<2x1xf32> to vector<2x32xf32>
      %26 = arith.mulf %24, %25 : vector<2x32xf32>
      %c0_23 = arith.constant 0 : index
      %c0_24 = arith.constant 0 : index
      %27 = vector.load %arg5[%c0_23, %c0_24] : memref<2x32xf32, #tpu.memory_space<vmem>>, vector<2x32xf32>
      tpu.vector_store %arg5[%c0_23, %c0_24], %26 {strides = array<i32>} : memref<2x32xf32, #tpu.memory_space<vmem>>, vector<2x32xf32>,
    } else {
    }
    return
  }
  func.func @transform_0(%arg0: i32, %arg1: i32, %arg2: i32) -> (i32, i32, i32) {
    %c0_i32 = arith.constant 0 : i32
    return %arg0, %arg2, %arg1 : i32, i32, i32
  }
  func.func @transform_1(%arg0: i32, %arg1: i32, %arg2: i32) -> (i32, i32, i32) {
    %c0_i32 = arith.constant 0 : i32
    %c0_i32_0 = arith.constant 0 : i32
    return %arg0, %arg2, %c0_i32 : i32, i32, i32
  }
  func.func @transform_2(%arg0: i32, %arg1: i32, %arg2: i32) -> (i32, i32) {
    %c0_i32 = arith.constant 0 : i32
    return %arg0, %arg1 : i32, i32
  }
}

</mosaic_0001>

<bundles_post_ra>
// kernel: tpu_custom_call.1
= control target key start
LH: loop header
LB: loop body
LE: loop exit
PB: predicated region body
PF: predicated region fallthrough
CT: control target
= control target key end

     0   :  { %vm63_vm0 = vcmask 7168   ;;  %v162_v2 = vmov 0   ;;  %vm18_vm1 = vcmask 1024   ;;  %s202_s0 = inlined_call_operand.vmem [shape: f32[2,8,32], index: 0, kind: input, shape index: {}]   ;;  %s203_s1 = inlined_call_operand.vmem [shape: s32[2,8,1], index: 1, kind: input, shape index: {}]   ;;  %s204_s2 = inlined_call_operand.hbm [shape: f32[2,32], index: 2, kind: output, shape index: {}]  }
   0x1   :  { %v22_v0 = vld [vmem:[%s203_s1] sm:$0xff]  ;;  %v23_v1 = vld [vmem:[%s203_s1 + $0x8] sm:$0xff]  ;;  %132 = vset.pattern.permute.xlu0 %v162_v2  ;;  %133 = vset.pattern.permute.xlu1 %v162_v2 }
   0x2   :  { %v24_v3 = vcvt.s32.f32 %v22_v0  ;;  %v25_v4 = vcvt.s32.f32 %v23_v1 }
   0x3   :  { %7 = vsyncpa [#allocation5], 0  ;;  %v163_v5 = vmov 0.0   ;;  %vm56_vm2 = vcmask 1041409   ;;  %vm16_vm7 = vcmask 254976   ;;  %v20_v35 = vld [vmem:[%s202_s0] sm:$0xff] }
   0x4   :  { %19 = vst.msk [vmem:[#allocation3] sm:$0x3] %vm18_vm1, %v163_v5  ;;  %28 = vperm.xlu0 %132, %v24_v3   ;;  %v64_v6 = vsel %vm63_vm0, %v24_v3, 0.0  ;;  %v71_v7 = vsel %vm63_vm0, %v25_v4, 0.0  ;;  %vm39_vm8 = vcmask 261120   ;;  %v21_v41 = vld [vmem:[%s202_s0 + $0x8] sm:$0xff] }
   0x5   :  { %v65_v8 = vrot.slane %v64_v6, 4  ;;  %v72_v9 = vrot.slane %v71_v7, 4  ;;  %17 = vst.msk [vmem:[#allocation2] sm:$0x3] %vm16_vm7, %v163_v5  ;;  %s164_s0 = smov [#allocation4]   ;;  %s120_s19 = sshll.u32 %s204_s2, 4  ;;  %s121_s19 = int_to_ptr.hbm [resolvable:$true] %s120_s19 }
   0x6   :  { %s118_s16 = sshll.u32 %s164_s0, 4  ;;  %s119_s16 = int_to_ptr.vmem [resolvable:$true] %s118_s16 }
   0x7   :  { %v66_v10 = vadd.f32 %v65_v8, %v64_v6  ;;  %v73_v11 = vadd.f32 %v72_v9, %v71_v7 }
   0x9   :  { %v67_v12 = vrot.slane %v66_v10, 2  ;;  %v74_v13 = vrot.slane %v73_v11, 2 }
   0xb   :  { %v68_v14 = vadd.f32 %v67_v12, %v66_v10  ;;  %v75_v15 = vadd.f32 %v74_v13, %v73_v11  ;;  %v62_v20 = vld [vmem:[#allocation3] sm:$0x3] }
   0xc   :  { %33 = vperm.xlu0 %132, %v25_v4   ;;  %v38_v55 = vld [vmem:[#allocation2] sm:$0x3] }
   0xd   :  { %v69_v16 = vrot.slane %v68_v14, 1  ;;  %v76_v17 = vrot.slane %v75_v15, 1 }
   0xf   :  { %v70_v18 = vadd.f32 %v69_v16, %v68_v14  ;;  %v77_v19 = vadd.f32 %v76_v17, %v75_v15 }
  0x11   :  { %v80_v21 = vsel %vm56_vm2, %v77_v19, %v70_v18 }
  0x12   :  { %v82_v22 = vadd.f32 %v80_v21, %v62_v20 }
  0x14   :  { %84 = vst.msk [vmem:[#allocation3] sm:$0x3] %vm18_vm1, %v82_v22 }
  0x1b   :  { %v88_v23 = vld [vmem:[#allocation3] sm:$0x3] }
  0x1c   :  { %v89_v24 = vmax.f32 %v88_v23, 1e-09 }
  0x1e   :  { %134 = vrcp.f32 %v89_v24  ;;  %v101_v27 = vand.u32 2147483648, %v89_v24  ;;  %vm95_vm3 = vweird.f32 %v89_v24  ;;  %v99_v29 = vand.u32 2147483647, %v89_v24 }
  0x20   :  { %v102_v31 = vor.u32 1.1754944e-38, %v101_v27  ;;  %vm100_vm6 = vcmp.eq.f32.partialorder %v99_v29, 8.507059e+37 }
  0x24   :  { %v135_v25 = vpop.eup %134 }
  0x25   :  { %v91_v26 = vmul.f32 %v135_v25, %v89_v24  ;;  %vm96_vm4 = vweird.f32 %v135_v25 }
  0x26   :  { %vm97_vm5 = vmor %vm95_vm3, %vm96_vm4 }
  0x27   :  { %v92_v28 = vsub.f32 1.0, %v91_v26 }
  0x29   :  { %v93_v30 = vmul.f32 %v135_v25, %v92_v28 }
  0x2b   :  { %v94_v32 = vadd.f32 %v135_v25, %v93_v30 }
  0x2d   :  { %v98_v33 = vsel %vm97_vm5, %v135_v25, %v94_v32 }
  0x2e   :  { %v103_v34 = vsel %vm100_vm6, %v102_v31, %v98_v33 }
  0x2f   :  { %108 = vperm.xlu1 %133, %v103_v34  }
  0x76   :  { %v29_v36 = vpop.permute.xlu0 %28 }
  0x77   :  { %v36_v37 = vmul.f32 %v29_v36, %v20_v35 }
  0x79   :  { %v40_v38 = vsel %vm39_vm8, %v36_v37, 0.0 }
  0x7a   :  { %v41_v39 = vrot.slane %v40_v38, 4 }
  0x7c   :  { %v42_v40 = vadd.f32 %v41_v39, %v40_v38 }
  0x7e   :  { %v34_v42 = vpop.permute.xlu0 %33  ;;  %v43_v44 = vrot.slane %v42_v40, 2 }
  0x7f   :  { %v37_v43 = vmul.f32 %v34_v42, %v21_v41 }
  0x80   :  { %v44_v47 = vadd.f32 %v43_v44, %v42_v40 }
  0x81   :  { %v47_v45 = vsel %vm39_vm8, %v37_v43, 0.0 }
  0x82   :  { %v48_v46 = vrot.slane %v47_v45, 4  ;;  %v45_v50 = vrot.slane %v44_v47, 1 }
  0x84   :  { %v49_v48 = vadd.f32 %v48_v46, %v47_v45  ;;  %v46_v53 = vadd.f32 %v45_v50, %v44_v47 }
  0x86   :  { %v50_v49 = vrot.slane %v49_v48, 2 }
  0x88   :  { %v51_v51 = vadd.f32 %v50_v49, %v49_v48 }
  0x8a   :  { %v52_v52 = vrot.slane %v51_v51, 1 }
  0x8c   :  { %v53_v54 = vadd.f32 %v52_v52, %v51_v51 }
  0x8e   :  { %v57_v56 = vsel %vm56_vm2, %v53_v54, %v46_v53 }
  0x8f   :  { %v59_v57 = vadd.f32 %v57_v56, %v38_v55 }
  0x91   :  { %61 = vst.msk [vmem:[#allocation2] sm:$0x3] %vm16_vm7, %v59_v57 }
  0x98   :  { %v105_v59 = vld [vmem:[#allocation2] sm:$0x3] }
  0xa1   :  { %v109_v58 = vpop.permute.xlu1 %108 }
  0xa2   :  { %v111_v60 = vmul.f32 %v109_v58, %v105_v59 }
  0xa4   :  { %112 = vst.msk [vmem:[#allocation4] sm:$0x3] %vm16_vm7, %v111_v60 }
  0xa5   :  { %123 = dma.vmem_to_hbm [thread:$0]  %s119_s16, 32, %s121_s19, [#allocation5]  }
  0xa6   :  { %160 = dma.done.wait [#allocation5], 32  }
  0xa7   :  { %161 = vsyncadd [#allocation5], 4294967264 }
  0xa8   :  { %128 = vsyncpa [#allocation5], 1 }

</bundles_post_ra>
